<compile_context>
chip_gen: v7x
topology: tpu7x:2x2x1
jax: 0.10.0
libtpu: 0.0.40
codegen_flags: <defaults>
</compile_context>

<pallas_src>
import functools

import jax
import jax.numpy as jnp
from jax.experimental import pallas as pl
from jax.experimental.pallas import tpu as pltpu


def _group_bn_kernel(x_ref, gamma_ref, beta_ref, o_ref, *, inv_n, inv_nm1, eps):
    # x_ref / o_ref: (Nb, Gt, L)   gamma_ref / beta_ref: (Gt, L), f32, lane-dense
    x = x_ref[...].astype(jnp.float32)

    # Two-pass moments (numerically safer than E[x^2] - E[x]^2).
    mean = jnp.sum(x, axis=2, keepdims=True) * inv_n               # (Nb, Gt, 1)
    diff = x - mean
    # torch.Tensor.std default = unbiased estimator (divide by n-1).
    var = jnp.sum(diff * diff, axis=2, keepdims=True) * inv_nm1    # (Nb, Gt, 1)

    # Module adds eps to std (not var).  Only Nb*Gt scalars -> exact divide is
    # free; approx=True (EUP) would also be fine but costs a little accuracy.
    inv_std = pl.reciprocal(jnp.sqrt(var) + eps, approx=False)     # (Nb, Gt, 1)

    # Output path: diff is already live for the variance pass, so normalize it
    # in place and apply the (lane-dense, pre-expanded) per-channel affine.
    normed = diff * inv_std                                        # (Nb, Gt, L)
    o_ref[...] = (normed * gamma_ref[...] + beta_ref[...]).astype(o_ref.dtype)


def _legal_group_tiles(group_num):
    # Block's second-minor dim must be a multiple of 8 or equal the full dim.
    tiles = {group_num}
    for d in range(8, group_num, 8):
        if group_num % d == 0:
            tiles.add(d)
    return sorted(tiles, reverse=True)


def _largest_divisor_le(n, cap):
    cap = max(1, min(n, cap))
    for d in range(cap, 0, -1):
        if n % d == 0:
            return d
    return 1


def _pick_tiles(n_batch, group_num, row_bytes, target_bytes):
    """Pick (batch tile, group tile) aiming for ~target_bytes per block."""
    gts = _legal_group_tiles(group_num)          # descending
    gt = gts[-1]                                 # smallest legal fallback
    for d in gts:
        if d * row_bytes <= target_bytes:
            gt = d
            break
    nb = _largest_divisor_le(n_batch, max(1, target_bytes // max(1, gt * row_bytes)))
    # Keep >= 2 grid steps when the problem allows it -> both TensorCores busy
    # on v7x megacore (harmless on single-TC v5e/v6e).
    if (n_batch // nb) * (group_num // gt) == 1:
        if n_batch >= 2:
            nb = _largest_divisor_le(n_batch, n_batch // 2)
        elif len(gts) > 1:
            gt = gts[1]
    return nb, gt


def group_batchnorm2d(x, gamma, beta, *, group_num=16, eps=1e-10,
                      target_block_bytes=2 * 1024 * 1024):
    N, C, H, W = x.shape
    total = C * H * W
    assert total % group_num == 0, "(C*H*W) must be divisible by group_num"
    L = total // group_num

    # Pure row-major reshape (no data movement): per-group slab on the lane axis.
    x3 = x.reshape(N, group_num, L)

    # Pre-expand per-channel affine params to the same lane-dense (g, L) layout.
    # Done once (one-sample-sized broadcast in HBM); fetched once per group tile
    # because their block index only depends on the slow (group) grid axis.
    def _expand(p):
        full = jnp.broadcast_to(p.reshape(C, 1, 1).astype(jnp.float32), (C, H, W))
        return full.reshape(group_num, L)

    g2 = _expand(gamma)
    b2 = _expand(beta)

    row_bytes = L * x.dtype.itemsize
    nb, gt = _pick_tiles(N, group_num, row_bytes, target_block_bytes)
    grid = (group_num // gt, N // nb)   # group axis outer -> params reused across batch
    # TODO(synk): if a single group row (L elements) ever exceeds the ~2 MiB
    # block budget (~6x that resident in VMEM, sized for v7x's 64 MiB), add a
    # lane-tiled "arbitrary" grid axis with VMEM moment accumulators
    # (single-pass sum/sumsq or a dedicated moments pass).

    kernel = functools.partial(
        _group_bn_kernel,
        inv_n=1.0 / L,
        inv_nm1=1.0 / max(L - 1, 1),   # guard degenerate L == 1 (torch -> NaN)
        eps=float(eps),
    )

    out = pl.pallas_call(
        kernel,
        out_shape=jax.ShapeDtypeStruct((N, group_num, L), x.dtype),
        grid_spec=pltpu.PrefetchScalarGridSpec(
            num_scalar_prefetch=0,
            grid=grid,
            in_specs=[
                pl.BlockSpec((nb, gt, L), lambda g, n: (n, g, 0)),
                pl.BlockSpec((gt, L), lambda g, n: (g, 0)),
                pl.BlockSpec((gt, L), lambda g, n: (g, 0)),
            ],
            out_specs=pl.BlockSpec((nb, gt, L), lambda g, n: (n, g, 0)),
        ),
        compiler_params=pltpu.CompilerParams(
            # Both axes independent -> megacore sharding on v7x.
            dimension_semantics=("parallel", "parallel"),
            # Explicit scoped-VMEM budget: safe on every generation and far
            # above the ~6x-block working set for the ~2 MiB block cap.
            vmem_limit_bytes=32 * 1024 * 1024,
        ),
    )(x3, g2, b2)

    return out.reshape(N, C, H, W)


def _reference(x, gamma, beta, group_num, eps):
    N, C, H, W = x.shape
    xr = x.reshape(N, group_num, -1)
    mean = xr.mean(axis=2, keepdims=True)
    std = jnp.sqrt(
        jnp.sum((xr - mean) ** 2, axis=2, keepdims=True) / (xr.shape[2] - 1)
    )
    xn = ((xr - mean) / (std + eps)).reshape(N, C, H, W)
    return xn * gamma + beta


if __name__ == "__main__":
    key = jax.random.PRNGKey(0)
    k_x, k_g = jax.random.split(key)

    N, C, H, W = 2, 32, 16, 16
    group_num = 16
    eps = 1e-10

    x = jax.random.normal(k_x, (N, C, H, W), dtype=jnp.float32)
    # nn.Parameter(torch.randn(c_num, 1, 1)) -> deterministic random init
    gamma = jax.random.normal(k_g, (C, 1, 1), dtype=jnp.float32)
    # nn.Parameter(torch.zeros(c_num, 1, 1))
    beta = jnp.zeros((C, 1, 1), dtype=jnp.float32)

    out = group_batchnorm2d(x, gamma, beta, group_num=group_num, eps=eps)
    out = jax.block_until_ready(out)

    ref = _reference(x, gamma, beta, group_num, eps)
    assert out.shape == (N, C, H, W)
    assert jnp.allclose(out, ref, atol=1e-4, rtol=1e-4)

    print("KERNEL_OK")
</pallas_src>

<mosaic_0001>
module attributes {stable_mosaic.version = 11 : i64} {
  func.func @_group_bn_kernel(%arg0: i32, %arg1: i32, %arg2: memref<1x16x512xf32, #tpu.memory_space<vmem>>, %arg3: memref<16x512xf32, #tpu.memory_space<vmem>>, %arg4: memref<16x512xf32, #tpu.memory_space<vmem>>, %arg5: memref<1x16x512xf32, #tpu.memory_space<vmem>>) attributes {dimension_semantics = [#tpu.dimension_semantics<parallel>, #tpu.dimension_semantics<parallel>], iteration_bounds = array<i64: 1, 2>, scalar_prefetch = 0 : i64, scratch_operands = 0 : i64, tpu.core_type = #tpu.core_type<tc>, window_params = [{transform_indices = @transform_0, window_bounds = array<i64: 1, 16, 512>}, {transform_indices = @transform_1, window_bounds = array<i64: 16, 512>}, {transform_indices = @transform_2, window_bounds = array<i64: 16, 512>}, {transform_indices = @transform_3, window_bounds = array<i64: 1, 16, 512>}]} {
    %c0 = arith.constant 0 : index
    %c0_0 = arith.constant 0 : index
    %c0_1 = arith.constant 0 : index
    %0 = vector.load %arg2[%c0, %c0_0, %c0_1] : memref<1x16x512xf32, #tpu.memory_space<vmem>>, vector<1x16x512xf32>
    %cst = arith.constant dense<0.000000e+00> : vector<1x16xf32>
    %1 = vector.multi_reduction <add>, %0, %cst [2] : vector<1x16x512xf32> to vector<1x16xf32>
    %2 = vector.shape_cast %1 : vector<1x16xf32> to vector<1x16x1xf32>
    %cst_2 = arith.constant 0.001953125 : f32
    %3 = vector.broadcast %cst_2 : f32 to vector<1x16x1xf32>
    %4 = arith.mulf %2, %3 : vector<1x16x1xf32>
    %5 = vector.broadcast %4 : vector<1x16x1xf32> to vector<1x16x512xf32>
    %6 = arith.subf %0, %5 : vector<1x16x512xf32>
    %7 = arith.mulf %6, %6 : vector<1x16x512xf32>
    %cst_3 = arith.constant dense<0.000000e+00> : vector<1x16xf32>
    %8 = vector.multi_reduction <add>, %7, %cst_3 [2] : vector<1x16x512xf32> to vector<1x16xf32>
    %9 = vector.shape_cast %8 : vector<1x16xf32> to vector<1x16x1xf32>
    %cst_4 = arith.constant 0.00195694715 : f32
    %10 = vector.broadcast %cst_4 : f32 to vector<1x16x1xf32>
    %11 = arith.mulf %9, %10 : vector<1x16x1xf32>
    %12 = math.sqrt %11 : vector<1x16x1xf32>
    %cst_5 = arith.constant 1.000000e-10 : f32
    %13 = vector.broadcast %cst_5 : f32 to vector<1x16x1xf32>
    %14 = arith.addf %12, %13 : vector<1x16x1xf32>
    %15 = tpu.reciprocal %14 : vector<1x16x1xf32> -> vector<1x16x1xf32>
    %16 = vector.broadcast %15 : vector<1x16x1xf32> to vector<1x16x512xf32>
    %17 = arith.mulf %6, %16 : vector<1x16x512xf32>
    %c0_6 = arith.constant 0 : index
    %c0_7 = arith.constant 0 : index
    %18 = vector.load %arg3[%c0_6, %c0_7] : memref<16x512xf32, #tpu.memory_space<vmem>>, vector<16x512xf32>
    %19 = vector.shape_cast %18 : vector<16x512xf32> to vector<1x16x512xf32>
    %20 = arith.mulf %17, %19 : vector<1x16x512xf32>
    %c0_8 = arith.constant 0 : index
    %c0_9 = arith.constant 0 : index
    %21 = vector.load %arg4[%c0_8, %c0_9] : memref<16x512xf32, #tpu.memory_space<vmem>>, vector<16x512xf32>
    %22 = vector.shape_cast %21 : vector<16x512xf32> to vector<1x16x512xf32>
    %23 = arith.addf %20, %22 : vector<1x16x512xf32>
    %c0_10 = arith.constant 0 : index
    %c0_11 = arith.constant 0 : index
    %c0_12 = arith.constant 0 : index
    %24 = vector.load %arg5[%c0_10, %c0_11, %c0_12] : memref<1x16x512xf32, #tpu.memory_space<vmem>>, vector<1x16x512xf32>
    tpu.vector_store %arg5[%c0_10, %c0_11, %c0_12], %23 {strides = array<i32>} : memref<1x16x512xf32, #tpu.memory_space<vmem>>, vector<1x16x512xf32>,
    return
  }
  func.func @transform_0(%arg0: i32, %arg1: i32) -> (i32, i32, i32) {
    %c0_i32 = arith.constant 0 : i32
    %c0_i32_0 = arith.constant 0 : i32
    return %arg1, %arg0, %c0_i32 : i32, i32, i32
  }
  func.func @transform_1(%arg0: i32, %arg1: i32) -> (i32, i32) {
    %c0_i32 = arith.constant 0 : i32
    %c0_i32_0 = arith.constant 0 : i32
    return %arg0, %c0_i32 : i32, i32
  }
  func.func @transform_2(%arg0: i32, %arg1: i32) -> (i32, i32) {
    %c0_i32 = arith.constant 0 : i32
    %c0_i32_0 = arith.constant 0 : i32
    return %arg0, %c0_i32 : i32, i32
  }
  func.func @transform_3(%arg0: i32, %arg1: i32) -> (i32, i32, i32) {
    %c0_i32 = arith.constant 0 : i32
    %c0_i32_0 = arith.constant 0 : i32
    return %arg1, %arg0, %c0_i32 : i32, i32, i32
  }
}

</mosaic_0001>

<bundles_post_ra>
// kernel: tpu_custom_call.1
= control target key start
LH: loop header
LB: loop body
LE: loop exit
PB: predicated region body
PF: predicated region fallthrough
CT: control target
= control target key end

     0   :  { %8 = vsyncpa [#allocation3], 0  ;;  %s1096_s0 = inlined_call_operand.hbm [shape: f32[2,16,512], index: 0, kind: input, shape index: {}]   ;;  %s1097_s1 = inlined_call_operand.hbm [shape: f32[16,512], index: 1, kind: input, shape index: {}]   ;;  %s1098_s2 = inlined_call_operand.hbm [shape: f32[16,512], index: 2, kind: input, shape index: {}]   ;;  %s1099_s3 = inlined_call_operand.hbm [shape: f32[2,16,512], index: 3, kind: output, shape index: {}]  }
   0x1   :  { %10 = vsyncpa [#allocation3 + $0x1], 0 }
   0x2   :  { %11 = vsyncpa [#allocation6], 0 }
   0x3   :  { %12 = vsyncpa [#allocation4], 0 }
   0x4   :  { %14 = vsyncpa [#allocation4 + $0x1], 0  ;;  %s818_s12 = smov 0   ;;  %s820_s13 = smov 0  }
   0x5   :  { %s822_s14 = smov 0   ;;  %s824_s15 = smov 0  }
   0x6   :  { %s826_s16 = smov 0   ;;  %s828_s17 = smov 0  }
   0x7 LB: > { %s500_s18 = sadd.s32 4294967295, %s788_s17   ;;  %s501_s19 = sadd.s32 4294967294, %s788_s17   ;;  %s788_s17 = sphi %s828_s17, %s20_s17   ;;  %s784_s16 = sphi %s826_s16, %s1121_s16   ;;  %s780_s15 = sphi %s824_s15, %s1120_s15   ;;  %s776_s14 = sphi %s822_s14, %s1119_s14   ;;  %s772_s13 = sphi %s820_s13, %s1118_s13   ;;  %s768_s12 = sphi %s818_s12, %s1117_s12  }
   0x8   : > { %p54_p0 = scmp.ne.s32.totalorder %s772_s13, %s768_s12  ;;  %p852_p1 = scmp.eq.s32.totalorder %s500_s18, 0 }
   0x9   : > { %p856_p2 = scmp.eq.s32.totalorder %s500_s18, 1  ;;  %p138_p3 = scmp.eq.s32.totalorder %s501_s19, 1 }
   0xa   : > { %s1104_s20 = scalar_select %p852_p1, 1, 0 }
   0xb   : > { %p862_p4 = por %p852_p1, %p54_p0  ;;  %p502_p5 = scmp.ge.s32.totalorder %s788_s17, 1 }
   0xc   : > { %p867_p6 = por %p138_p3, %p54_p0  ;;  %p145_p7 = scmp.lt.s32.totalorder %s788_s17, 3 }
   0xd   : > { %s1106_s22 = scalar_select %p862_p4, 1, 0 }
   0xe   : > { %s1107_s23 = scalar_select %p867_p6, 1, 0 }
   0xf   : > { %p872_p8 = pnand %p502_p5, %p145_p7  ;;  %s790_s25 = smov [#allocation5]  }
  0x10   : > { %s161_s26 = sshll.u32 %s790_s25, 4  ;;  %s791_s28 = smov [#allocation7]   ;;  %s876_s26 = int_to_ptr.vmem [resolvable:$true] %s161_s26 }
  0x11   : > { %p533_p9 = pneg %p872_p8  ;;  %s178_s29 = sshll.u32 %s791_s28, 4  ;;  %s887_s29 = int_to_ptr.vmem [resolvable:$true] %s178_s29 }
  0x12   : > { %s616_s5 = scalar_lea.hbm %s1097_s1, 1024 }
  0x13   : > { %p883_p11 = pnand %p533_p9, %p852_p1  ;;  %p617_p12 = scmp.ne.s32.totalorder %s1097_s1, %s616_s5 }
  0x14   : > { %p623_p5 = scmp.lt.u32.totalorder %s616_s5, %s1097_s1 }
  0x15   : > { %p618_p13 = pneg %p883_p11 }
  0x17   : > { %p619_p0 = pnand %p618_p13, %p617_p12 }
  0x19   : > { %p620_p3 = pneg %p619_p0 }
  0x1b   : > { %p625_p7 = pnand %p623_p5, %p620_p3 }
  0x1d   : > { %628 = shalt.err (!%p625_p7)
}
  0x1e   : > { %s629_s10 = scalar_lea.vmem %s876_s26, 1024  ;;  %p637_p1 = scmp.lt.s32.totalorder %s876_s26, %s876_s26 }
  0x1f   : > { %p630_p9 = scmp.ne.s32.totalorder %s876_s26, %s629_s10  ;;  %p638_p12 = scmp.lt.s32.totalorder %s629_s10, %s629_s10 }
  0x21   : > { %p632_p10 = pnand %p630_p9, %p618_p13  ;;  %p639_p0 = por %p638_p12, %p637_p1 }
  0x23   : > { %p633_p6 = pneg %p632_p10 }
  0x25   : > { %p640_p4 = pnand %p639_p0, %p633_p6 }
  0x27   : > { %643 = shalt.err (!%p640_p4)
}
  0x28   : > { %s792_s11 = smov 512   ;;  %s793_s18 = smov 32  }
  0x29   : > { %536 = dma.hbm_to_vmem [thread:$0]  (!%p883_p11), %s1097_s1, 1024, %s876_s26, [#allocation6], %s792_s11, %s792_s11, %s793_s18  }
  0x2a   : > { %s644_s4 = scalar_lea.hbm %s1098_s2, 1024 }
  0x2b   : > { %p645_p1 = scmp.ne.s32.totalorder %s1098_s2, %s644_s4  ;;  %p651_p10 = scmp.lt.u32.totalorder %s644_s4, %s1098_s2 }
  0x2d   : > { %p647_p4 = pnand %p645_p1, %p618_p13 }
  0x2f   : > { %p648_p6 = pneg %p647_p4 }
  0x31   : > { %p653_p3 = pnand %p651_p10, %p648_p6 }
  0x33   : > { %656 = shalt.err (!%p653_p3)
}
  0x34   : > { %s657_s26 = scalar_lea.vmem %s887_s29, 1024  ;;  %p665_p12 = scmp.lt.s32.totalorder %s887_s29, %s887_s29 }
  0x35   : > { %p658_p5 = scmp.ne.s32.totalorder %s887_s29, %s657_s26  ;;  %p666_p0 = scmp.lt.s32.totalorder %s657_s26, %s657_s26 }
  0x37   : > { %p660_p7 = pnand %p658_p5, %p618_p13  ;;  %p667_p1 = por %p666_p0, %p665_p12 }
  0x39   : > { %p661_p9 = pneg %p660_p7 }
  0x3b   : > { %p668_p4 = pnand %p667_p1, %p661_p9 }
  0x3d   : > { %671 = shalt.err (!%p668_p4)
}
  0x3e   : > { %539 = dma.hbm_to_vmem [thread:$0]  (!%p883_p11), %s1098_s2, 1024, %s887_s29, [#allocation6], %s792_s11, %s792_s11, %s793_s18  }
  0x3f   : > { %s29_s27 = sadd.s32 1, %s784_s16  ;;  %s41_s19 = sadd.s32 1, %s776_s14 }
  0x40   : > { %p30_p13 = scmp.ge.s32.totalorder %s29_s27, 2  ;;  %p48_p6 = scmp.ne.s32.totalorder %s776_s14, %s772_s13 }
  0x41   : > { %p49_p10 = scmp.eq.s32.totalorder %s788_s17, 0  ;;  %p550_p3 = scmp.lt.s32.totalorder %s788_s17, 2 }
  0x42   : > { %s1123_s27 = smov (%p30_p13, %s29_s27), 0  ;;  %p957_p7 = por %p856_p2, %p48_p6 }
  0x43   : > { %p50_p5 = por %p49_p10, %p48_p6  ;;  %s36_s28 = ssub.s32 %s784_s16, %s1123_s27 }
  0x44   : > { %s1110_s25 = scalar_select %p957_p7, 1, 0 }
  0x45   : > { %s192_s30 = sand.u32 1, %s776_s14   ;;  %p39_p9 = scmp.eq.s32.totalorder %s36_s28, 0 }
  0x46   : > { %s506_s29 = sshll.u32 %s192_s30, 6  ;;  %s519_s4 = sshll.u32 %s784_s16, 10 }
  0x47   : > { %s966_s5 = scalar_select %p39_p9, %s776_s14, %s41_s19  }
  0x48   : > { %s971_s8 = scalar_lea.hbm %s1096_s0, %s519_s4  ;;  %s196_s21 = scalar_lea.vmem [#allocation2], %s506_s29 }
  0x49   : > { %s206_s26 = sshll.u32 %s196_s21, 4  ;;  %p975_p2 = pnand %p550_p3, %p50_p5  ;;  %s979_s26 = int_to_ptr.vmem [resolvable:$true] %s206_s26 }
  0x4a   : > { %s981_s10 = scalar_lea.sflag [#allocation3], %s192_s30  ;;  %s672_s19 = scalar_lea.hbm %s971_s8, 1024 }
  0x4b   : > { %p673_p11 = scmp.ne.s32.totalorder %s971_s8, %s672_s19  ;;  %p674_p12 = pneg %p975_p2 }
  0x4c   : > { %s677_s4 = scalar_lea.hbm %s1096_s0, 2048  ;;  %p678_p4 = scmp.lt.u32.totalorder %s971_s8, %s1096_s0 }
  0x4d   : > { %p675_p0 = pnand %p674_p12, %p673_p11  ;;  %p679_p13 = scmp.lt.u32.totalorder %s677_s4, %s672_s19 }
  0x4e   : > { %p681_p10 = scmp.lt.u32.totalorder %s672_s19, %s971_s8 }
  0x4f   : > { %p676_p1 = pneg %p675_p0  ;;  %p680_p6 = por %p679_p13, %p678_p4 }
  0x51   : > { %p682_p3 = por %p681_p10, %p680_p6 }
  0x53   : > { %p683_p5 = pnand %p682_p3, %p676_p1 }
  0x55   : > { %686 = shalt.err (!%p683_p5)
}
  0x56   : > { %s687_s30 = scalar_lea.vmem %s979_s26, 1024  ;;  %s794_s21 = smov [#allocation2]  }
  0x57   : > { %p688_p9 = scmp.ne.s32.totalorder %s979_s26, %s687_s30  ;;  %s692_s28 = sshll.u32 %s794_s21, 4  ;;  %s693_s28 = int_to_ptr.vmem [resolvable:$false] %s692_s28 }
  0x58   : > { %s694_s29 = scalar_lea.vmem %s693_s28, 2048  ;;  %p695_p7 = scmp.lt.s32.totalorder %s979_s26, %s693_s28 }
  0x59   : > { %p690_p11 = pnand %p688_p9, %p674_p12  ;;  %p696_p4 = scmp.lt.s32.totalorder %s694_s29, %s687_s30 }
  0x5b   : > { %p691_p0 = pneg %p690_p11  ;;  %p697_p13 = por %p696_p4, %p695_p7 }
  0x5d   : > { %p698_p6 = pnand %p697_p13, %p691_p0 }
  0x5f   : > { %701 = shalt.err (!%p698_p6)
}
  0x60   : > { %543 = dma.hbm_to_vmem [thread:$0]  (!%p975_p2), %s971_s8, 1024, %s979_s26, %s981_s10, %s792_s11, %s792_s11, %s793_s18  }
  0x61   : > { %218 = sbr.rel (%p872_p8) target bundleno = 467 (0x1d3), region = 32  ;;  %s1015_s19 = sand.u32 (!%p872_p8), 1, %s772_s13  }
  0x62   : > { %s510_s4 = sshll.u32 (!%p872_p8), %s1015_s19, 6  ;;  %s221_s6 = scalar_lea.sflag (!%p872_p8), [#allocation3], %s1015_s19 }
  0x63   : > { %s224_s9 = scalar_lea.vmem (!%p872_p8), [#allocation2], %s510_s4  ;;  %p1112_p7 = scmp.ne.s32.totalorder (!%p872_p8), %s1106_s22, 0 }
  0x68   : > { %755 = dma.done.wait (%p1112_p7), %s221_s6, 1024  }
  0x69   : > { %757 = vsyncadd (%p1112_p7), %s221_s6, 4294966272  ;;  %p1113_p2 = scmp.ne.s32.totalorder %s1104_s20, 0 }
  0x6b   : > { %759 = dma.done.wait (%p1113_p2), [#allocation6], 2048  }
  0x6c   : > { %761 = vsyncadd (%p1113_p2), [#allocation6], 4294965248  ;;  %v259_v0 = vld [vmem:[%s224_s9] sm:$0xff]  ;;  %v260_v1 = vld [vmem:[%s224_s9 + $0x8] sm:$0xff]  ;;  %s520_s20 = sshll.u32 %s780_s15, 10  ;;  %s254_s22 = scalar_lea.vmem [#allocation8], %s510_s4 }
  0x6d   : > { %v261_v2 = vld [vmem:[%s224_s9 + $0x10] sm:$0xff]  ;;  %v267_v3 = vadd.f32 %v260_v1, %v259_v0  ;;  %v263_v4 = vld [vmem:[%s224_s9 + $0x20] sm:$0xff]  ;;  %v264_v5 = vld [vmem:[%s224_s9 + $0x28] sm:$0xff]  ;;  %s390_s24 = sshll.u32 %s254_s22, 4  ;;  %s1045_s18 = scalar_lea.hbm %s1099_s3, %s520_s20  ;;  %s1047_s24 = int_to_ptr.vmem [resolvable:$true] %s390_s24 }
  0x6e   : > { %v262_v6 = vld [vmem:[%s224_s9 + $0x18] sm:$0xff]  ;;  %v265_v7 = vld [vmem:[%s224_s9 + $0x30] sm:$0xff]  ;;  %v272_v8 = vadd.f32 %v264_v5, %v263_v4  ;;  %v333_v56 = vld [vmem:[#allocation5] sm:$0xff]  ;;  %s374_s8 = scalar_lea.sflag [#allocation4], %s1015_s19  ;;  %s702_s26 = scalar_lea.vmem %s1047_s24, 1024 }
  0x6f   : > { %v268_v9 = vadd.f32 %v267_v3, %v261_v2  ;;  %v266_v10 = vld [vmem:[%s224_s9 + $0x38] sm:$0xff]  ;;  %v334_v58 = vld [vmem:[#allocation5 + $0x8] sm:$0xff]  ;;  %v335_v59 = vld [vmem:[#allocation5 + $0x10] sm:$0xff]  ;;  %p703_p8 = scmp.ne.s32.totalorder %s1047_s24, %s702_s26  ;;  %p1114_p12 = scmp.ne.s32.totalorder %s1110_s25, 0 }
  0x70   : > { %v273_v11 = vadd.f32 %v272_v8, %v265_v7  ;;  %v336_v60 = vld [vmem:[#allocation5 + $0x18] sm:$0xff]  ;;  %v351_v8 = vld [vmem:[#allocation7 + $0x10] sm:$0xff]  ;;  %s795_s10 = smov [#allocation8]  }
  0x71   : > { %v269_v12 = vadd.f32 %v268_v9, %v262_v6  ;;  %v352_v9 = vld [vmem:[#allocation7 + $0x18] sm:$0xff]  ;;  %p704_p1 = pnand %p703_p8, %p1114_p12  ;;  %s706_s7 = sshll.u32 %s795_s10, 4  ;;  %s707_s7 = int_to_ptr.vmem [resolvable:$false] %s706_s7 }
  0x72   : > { %v274_v13 = vadd.f32 %v273_v11, %v266_v10  ;;  %v338_v11 = vld [vmem:[#allocation5 + $0x28] sm:$0xff]  ;;  %s708_s30 = scalar_lea.vmem %s707_s7, 2048  ;;  %p709_p3 = scmp.lt.s32.totalorder %s1047_s24, %s707_s7 }
  0x73   : > { %270 = vadd.xlane.f32.xlu0 %v269_v12  ;;  %v339_v12 = vld [vmem:[#allocation5 + $0x30] sm:$0xff]  ;;  %p705_p10 = pneg %p704_p1  ;;  %p710_p5 = scmp.lt.s32.totalorder %s708_s30, %s702_s26 }
  0x75   : > { %p711_p9 = por %p710_p5, %p709_p3 }
  0x77   : > { %275 = vadd.xlane.f32.xlu0 %v274_v13  ;;  %v340_v13 = vld [vmem:[#allocation5 + $0x38] sm:$0xff]  ;;  %p712_p11 = pnand %p711_p9, %p705_p10 }
 0x100   : > { %v271_v14 = vpop.xlane.xlu0 %270 }
 0x101   : > { %v277_v15 = vmul.f32 0.001953125, %v271_v14 }
 0x103   : > { %v279_v16 = vsub.f32 %v259_v0, %v277_v15  ;;  %v280_v17 = vsub.f32 %v260_v1, %v277_v15  ;;  %v281_v18 = vsub.f32 %v261_v2, %v277_v15  ;;  %v282_v20 = vsub.f32 %v262_v6, %v277_v15  ;;  %v337_v1 = vld [vmem:[#allocation5 + $0x20] sm:$0xff] }
 0x104   : > { %v276_v19 = vpop.xlane.xlu0 %275  ;;  %v349_v2 = vld [vmem:[#allocation7] sm:$0xff] }
 0x105   : > { %v278_v21 = vmul.f32 0.001953125, %v276_v19  ;;  %v287_v22 = vmul.f32 %v279_v16, %v279_v16  ;;  %v288_v23 = vmul.f32 %v280_v17, %v280_v17  ;;  %v289_v24 = vmul.f32 %v281_v18, %v281_v18  ;;  %v354_v19 = vld [vmem:[#allocation7 + $0x28] sm:$0xff] }
 0x106   : > { %v290_v29 = vmul.f32 %v282_v20, %v282_v20 }
 0x107   : > { %v1029_v25 = vsub.f32 %v263_v4, %v278_v21  ;;  %v1031_v26 = vsub.f32 %v264_v5, %v278_v21  ;;  %v295_v27 = vadd.f32 %v288_v23, %v287_v22  ;;  %v285_v28 = vsub.f32 %v265_v7, %v278_v21  ;;  %v350_v7 = vld [vmem:[#allocation7 + $0x8] sm:$0xff] }
 0x108   : > { %v286_v31 = vsub.f32 %v266_v10, %v278_v21  ;;  %v356_v21 = vld [vmem:[#allocation7 + $0x38] sm:$0xff] }
 0x109   : > { %v296_v30 = vadd.f32 %v295_v27, %v289_v24  ;;  %v291_v32 = vmul.f32 %v1029_v25, %v1029_v25  ;;  %v292_v33 = vmul.f32 %v1031_v26, %v1031_v26  ;;  %v293_v35 = vmul.f32 %v285_v28, %v285_v28 }
 0x10a   : > { %v294_v37 = vmul.f32 %v286_v31, %v286_v31 }
 0x10b   : > { %v297_v34 = vadd.f32 %v296_v30, %v290_v29  ;;  %v300_v36 = vadd.f32 %v292_v33, %v291_v32 }
 0x10d   : > { %298 = vadd.xlane.f32.xlu1 %v297_v34  ;;  %v301_v38 = vadd.f32 %v300_v36, %v293_v35 }
 0x10f   : > { %v302_v39 = vadd.f32 %v301_v38, %v294_v37 }
 0x111   : > { %303 = vadd.xlane.f32.xlu1 %v302_v39 }
 0x19a   : > { %v299_v40 = vpop.xlane.xlu1 %298 }
 0x19b   : > { %v305_v41 = vmul.f32 0.0019569471, %v299_v40 }
 0x19d   : > { %608 = vrsqrt.f32 %v305_v41  ;;  %vm309_vm0 = vcmp.eq.f32.partialorder %v305_v41, inf  ;;  %v312_v46 = vand.u32 2147483648, %v305_v41  ;;  %vm311_vm1 = vcmp.eq.f32.partialorder %v305_v41, 0.0 }
 0x19e   : > { %v304_v42 = vpop.xlane.xlu1 %303 }
 0x19f   : > { %v306_v43 = vmul.f32 0.0019569471, %v304_v42 }
 0x1a1   : > { %610 = vrsqrt.f32 %v306_v43  ;;  %vm316_vm2 = vcmp.eq.f32.partialorder %v306_v43, inf  ;;  %v319_v52 = vand.u32 2147483648, %v306_v43  ;;  %vm318_vm3 = vcmp.eq.f32.partialorder %v306_v43, 0.0 }
 0x1a7   : > { %v609_v44 = vpop.eup %608 }
 0x1a8   : > { %v308_v45 = vmul.f32 %v609_v44, %v305_v41 }
 0x1aa   : > { %v310_v47 = vsel %vm309_vm0, %v305_v41, %v308_v45 }
 0x1ab   : > { %v611_v48 = vpop.eup %610  ;;  %v313_v49 = vsel %vm311_vm1, %v312_v46, %v310_v47 }
 0x1ac   : > { %v321_v50 = vadd.f32 1e-10, %v313_v49  ;;  %v315_v51 = vmul.f32 %v611_v48, %v306_v43 }
 0x1ae   : > { %612 = vrcp.f32 %v321_v50  ;;  %v317_v53 = vsel %vm316_vm2, %v306_v43, %v315_v51 }
 0x1af   : > { %v320_v54 = vsel %vm318_vm3, %v319_v52, %v317_v53 }
 0x1b0   : > { %v322_v55 = vadd.f32 1e-10, %v320_v54 }
 0x1b2   : > { %614 = vrcp.f32 %v322_v55 }
 0x1b8   : > { %v613_v57 = vpop.eup %612 }
 0x1b9   : > { %v325_v61 = vmul.f32 %v613_v57, %v279_v16  ;;  %v326_v62 = vmul.f32 %v613_v57, %v280_v17  ;;  %v327_v63 = vmul.f32 %v613_v57, %v281_v18  ;;  %v328_v0 = vmul.f32 %v613_v57, %v282_v20  ;;  %v353_v18 = vld [vmem:[#allocation7 + $0x20] sm:$0xff]  ;;  %v355_v20 = vld [vmem:[#allocation7 + $0x30] sm:$0xff] }
 0x1bb   : > { %v341_v3 = vmul.f32 %v333_v56, %v325_v61  ;;  %v342_v4 = vmul.f32 %v334_v58, %v326_v62  ;;  %v343_v5 = vmul.f32 %v335_v59, %v327_v63  ;;  %v344_v6 = vmul.f32 %v336_v60, %v328_v0 }
 0x1bc   : > { %v615_v10 = vpop.eup %614 }
 0x1bd   : > { %v329_v14 = vmul.f32 %v615_v10, %v1029_v25  ;;  %v330_v15 = vmul.f32 %v615_v10, %v1031_v26  ;;  %v331_v16 = vmul.f32 %v615_v10, %v285_v28  ;;  %v332_v17 = vmul.f32 %v615_v10, %v286_v31 }
 0x1be   : > { %v357_v22 = vadd.f32 %v349_v2, %v341_v3  ;;  %v358_v23 = vadd.f32 %v350_v7, %v342_v4  ;;  %v359_v24 = vadd.f32 %v351_v8, %v343_v5  ;;  %v360_v27 = vadd.f32 %v352_v9, %v344_v6 }
 0x1bf   : > { %v345_v29 = vmul.f32 %v337_v1, %v329_v14  ;;  %v346_v30 = vmul.f32 %v338_v11, %v330_v15  ;;  %v347_v32 = vmul.f32 %v339_v12, %v331_v16  ;;  %v348_v25 = vmul.f32 %v340_v13, %v332_v17 }
 0x1c0   : > { %365 = vst [vmem:[%s254_s22] sm:$0xff] %v357_v22  ;;  %366 = vst [vmem:[%s254_s22 + $0x8] sm:$0xff] %v358_v23 }
 0x1c1   : > { %367 = vst [vmem:[%s254_s22 + $0x10] sm:$0xff] %v359_v24  ;;  %368 = vst [vmem:[%s254_s22 + $0x18] sm:$0xff] %v360_v27  ;;  %v361_v26 = vadd.f32 %v353_v18, %v345_v29  ;;  %v362_v28 = vadd.f32 %v354_v19, %v346_v30  ;;  %v363_v31 = vadd.f32 %v355_v20, %v347_v32 }
 0x1c2   : > { %v364_v33 = vadd.f32 %v356_v21, %v348_v25 }
 0x1c3   : > { %369 = vst [vmem:[%s254_s22 + $0x20] sm:$0xff] %v361_v26  ;;  %370 = vst [vmem:[%s254_s22 + $0x28] sm:$0xff] %v362_v28 }
 0x1c4   : > { %371 = vst [vmem:[%s254_s22 + $0x30] sm:$0xff] %v363_v31  ;;  %372 = vst [vmem:[%s254_s22 + $0x38] sm:$0xff] %v364_v33 }
 0x1c5   : > { %715 = shalt.err (!%p712_p11)
}
 0x1c6   : > { %s716_s21 = scalar_lea.hbm %s1045_s18, 1024  ;;  %s720_s4 = scalar_lea.hbm %s1099_s3, 2048 }
 0x1c7   : > { %p717_p0 = scmp.ne.s32.totalorder %s1045_s18, %s716_s21  ;;  %p721_p6 = scmp.lt.u32.totalorder %s1045_s18, %s1099_s3 }
 0x1c8   : > { %p722_p7 = scmp.lt.u32.totalorder %s720_s4, %s716_s21  ;;  %p724_p8 = scmp.lt.u32.totalorder %s716_s21, %s1045_s18 }
 0x1c9   : > { %p718_p4 = pnand %p717_p0, %p1114_p12 }
 0x1ca   : > { %p723_p2 = por %p722_p7, %p721_p6 }
 0x1cb   : > { %p719_p13 = pneg %p718_p4 }
 0x1cc   : > { %p725_p1 = por %p724_p8, %p723_p2 }
 0x1ce   : > { %p726_p10 = pnand %p725_p1, %p719_p13 }
 0x1d0   : > { %729 = shalt.err (!%p726_p10)
}
 0x1d1   : > { %s796_s20 = smov 512   ;;  %s797_s22 = smov 32  }
 0x1d2   : > { %531 = dma.vmem_to_hbm [thread:$0]  (%p1114_p12), %s1047_s24, 1024, %s1045_s18, %s374_s8, %s796_s20, %s796_s20, %s797_s22  }
 0x1d3 PF: > { %s405_s15 = sand.u32 1, %s768_s12   ;;  %p1115_p3 = scmp.ne.s32.totalorder %s1107_s23, 0 }
 0x1d4   : > { %p1116_p5 = scmp.ge.s32.totalorder %s788_s17, 2  ;;  %s406_s11 = scalar_lea.sflag [#allocation4], %s405_s15 }
 0x1d6   : > { %p545_p9 = pnand %p1116_p5, %p1115_p3 }
 0x1d8   : > { %763 = dma.done.wait (!%p545_p9), %s406_s11, 1024  }
 0x1d9   : > { %765 = vsyncadd (!%p545_p9), %s406_s11, 4294966272  ;;  %s20_s17 = sadd.s32 1, %s788_s17   ;;  %s1117_s12 = smov %s772_s13 }
 0x1da   : > { %p17_p11 = scmp.ge.s32.totalorder %s20_s17, 4   ;;  %s1118_s13 = smov %s776_s14 }
 0x1db   : > { %s1119_s14 = smov %s966_s5  ;;  %s1120_s15 = smov %s784_s16 }
 0x1dc   : > { %s1121_s16 = smov %s1123_s27  ;;  %19 = sbr.rel (!%p17_p11) target bundleno = 7 (0x7), region = 87 }
 0x1e3   :  { %411 = vsyncpa [#allocation3], 1 }
 0x1e4   :  { %413 = vsyncpa [#allocation3 + $0x1], 1 }
 0x1e5   :  { %414 = vsyncpa [#allocation6], 1 }
 0x1e6   :  { %415 = vsyncpa [#allocation4], 1 }
 0x1e7   :  { %417 = vsyncpa [#allocation4 + $0x1], 1 }

</bundles_post_ra>
